<compile_context>
chip_gen: v7x
topology: tpu7x:2x2x1
jax: 0.10.0
libtpu: 0.0.40
codegen_flags: <defaults>
</compile_context>

<pallas_src>
import numpy as np
import jax
import jax.numpy as jnp
from jax import lax
from jax.experimental import pallas as pl
from jax.experimental.pallas import tpu as pltpu

K = 3                  # kernel_size
PAD = (K - 1) // 2     # "same" padding
STRIDE = 1             # module instantiated with stride=1
# TODO(synk): only stride=1 / kernel=3 / eval-mode (running-stat BN, identity
# dropout, shortcut-present) semantics are implemented here.


def residual_block_kernel(xcol_ref, w_ref, shift_ref, out_ref):
    # xcol_ref : (Bt, K*Cin, Lt)   im2col'ed input tile (NCL layout, L on lanes)
    # w_ref    : (2*Cout, K*Cin)   rows [0:Cout]  = conv1 weight * bn1 scale
    #                              rows [Cout: ]  = 1x1 shortcut weight * bn_s scale
    #                                               (placed in the center-tap cols)
    # shift_ref: (2*Cout, 1)       folded (conv bias + BN) shifts
    # out_ref  : (Bt, Cout, Lt)
    bt, cout, _ = out_ref.shape
    w = w_ref[...]
    shift = shift_ref[...]

    for b in range(bt):                          # static, small batch tile
        # one fused MXU matmul: main conv (all 3 taps) + shortcut together
        y = jnp.dot(w, xcol_ref[b], preferred_element_type=jnp.float32) + shift
        main = jnp.maximum(y[:cout, :], 0.0)     # relu(bn1(conv1(x))); dropout = id (eval)
        sc = y[cout:, :]                         # bn_s(conv1x1_s(x))
        out_ref[b] = jnp.maximum(main + sc, 0.0).astype(out_ref.dtype)


def residual_block(x_ncl, params, eps=1e-5, block_batch=8, block_len=512):
    """x_ncl: (N, Cin, L) float32 (PyTorch Conv1d layout). Returns (N, Cout, L)."""
    w1, b1 = params["conv1_w"], params["conv1_b"]                  # (Cout,Cin,K), (Cout,)
    g1, be1, m1, v1 = params["bn1_g"], params["bn1_b"], params["bn1_m"], params["bn1_v"]
    ws, bs = params["sc_w"], params["sc_b"]                        # (Cout,Cin,1), (Cout,)
    gs, bes, ms, vs = params["bns_g"], params["bns_b"], params["bns_m"], params["bns_v"]

    N, Cin, L = x_ncl.shape
    Cout = w1.shape[0]
    KC = K * Cin

    # ---- fold BN (eval) into per-channel scale / shift; fold scale into weights ----
    scale1 = g1 / jnp.sqrt(v1 + eps)
    shift1 = be1 + (b1 - m1) * scale1
    scale_s = gs / jnp.sqrt(vs + eps)
    shift_s = bes + (bs - ms) * scale_s

    # conv1 weight -> (Cout, K*Cin) with column index k*Cin + c, BN scale folded in
    w1_col = jnp.transpose(w1, (0, 2, 1)).reshape(Cout, KC) * scale1[:, None]
    # shortcut 1x1 weight occupies only the center-tap columns (x itself)
    ws_col = jnp.zeros((Cout, KC), jnp.float32).at[:, PAD * Cin:(PAD + 1) * Cin].set(
        ws[:, :, 0] * scale_s[:, None])
    w_cat = jnp.concatenate([w1_col, ws_col], axis=0)              # (2*Cout, K*Cin)
    shift_cat = jnp.concatenate([shift1, shift_s]).reshape(2 * Cout, 1)

    # ---- im2col along length (layout plumbing; keeps L on the lane axis) ----
    xpad = jnp.pad(x_ncl, ((0, 0), (0, 0), (PAD, PAD)))
    xcol = jnp.concatenate([xpad[:, :, k:k + L] for k in range(K)], axis=1)  # (N, KC, L)

    # ---- tiling: several batch elements per grid step, lane-dense L tiles ----
    Bt = min(N, block_batch)
    Np = pl.cdiv(N, Bt) * Bt
    if Np != N:
        xcol = jnp.pad(xcol, ((0, Np - N), (0, 0), (0, 0)))
    Lt = L if L <= block_len else block_len        # 512 is a multiple of 128

    grid = (Np // Bt, pl.cdiv(L, Lt))

    out = pl.pallas_call(
        residual_block_kernel,
        out_shape=jax.ShapeDtypeStruct((Np, Cout, L), x_ncl.dtype),
        grid=grid,
        in_specs=[
            pl.BlockSpec((Bt, KC, Lt), lambda b, l: (b, 0, l)),
            pl.BlockSpec((2 * Cout, KC), lambda b, l: (0, 0)),
            pl.BlockSpec((2 * Cout, 1), lambda b, l: (0, 0)),
        ],
        out_specs=pl.BlockSpec((Bt, Cout, Lt), lambda b, l: (b, 0, l)),
        compiler_params=pltpu.CompilerParams(
            dimension_semantics=("parallel", "parallel")),
    )(xcol, w_cat, shift_cat)

    return out[:N] if Np != N else out             # already in NCL layout


def residual_block_reference(x_ncl, params, eps=1e-5):
    """Pure-JAX reference (lax.conv) mirroring the PyTorch eval forward."""
    def bn(y, g, b, m, v):
        s = g / jnp.sqrt(v + eps)
        return (y - m[None, :, None]) * s[None, :, None] + b[None, :, None]

    conv = lax.conv_general_dilated(
        x_ncl, params["conv1_w"], window_strides=(STRIDE,), padding=[(PAD, PAD)],
        dimension_numbers=("NCH", "OIH", "NCH")) + params["conv1_b"][None, :, None]
    out = jnp.maximum(bn(conv, params["bn1_g"], params["bn1_b"],
                         params["bn1_m"], params["bn1_v"]), 0.0)
    sc = lax.conv_general_dilated(
        x_ncl, params["sc_w"], window_strides=(STRIDE,), padding=[(0, 0)],
        dimension_numbers=("NCH", "OIH", "NCH")) + params["sc_b"][None, :, None]
    sc = bn(sc, params["bns_g"], params["bns_b"], params["bns_m"], params["bns_v"])
    return jnp.maximum(out + sc, 0.0)


if __name__ == "__main__":
    N, Cin, Cout, L = 2, 4, 8, 16

    key = jax.random.PRNGKey(0)
    ks = jax.random.split(key, 12)
    params = {
        "conv1_w": jax.random.normal(ks[0], (Cout, Cin, K), jnp.float32) * 0.2,
        "conv1_b": jax.random.normal(ks[1], (Cout,), jnp.float32) * 0.1,
        "bn1_g":   jax.random.uniform(ks[2], (Cout,), jnp.float32, 0.5, 1.5),
        "bn1_b":   jax.random.normal(ks[3], (Cout,), jnp.float32) * 0.1,
        "bn1_m":   jax.random.normal(ks[4], (Cout,), jnp.float32) * 0.1,
        "bn1_v":   jax.random.uniform(ks[5], (Cout,), jnp.float32, 0.5, 1.5),
        "sc_w":    jax.random.normal(ks[6], (Cout, Cin, 1), jnp.float32) * 0.2,
        "sc_b":    jax.random.normal(ks[7], (Cout,), jnp.float32) * 0.1,
        "bns_g":   jax.random.uniform(ks[8], (Cout,), jnp.float32, 0.5, 1.5),
        "bns_b":   jax.random.normal(ks[9], (Cout,), jnp.float32) * 0.1,
        "bns_m":   jax.random.normal(ks[10], (Cout,), jnp.float32) * 0.1,
        "bns_v":   jax.random.uniform(ks[11], (Cout,), jnp.float32, 0.5, 1.5),
    }

    x = jax.random.normal(jax.random.PRNGKey(42), (N, Cin, L), jnp.float32)

    out = residual_block(x, params)
    out = jax.block_until_ready(out)

    ref = jax.block_until_ready(residual_block_reference(x, params))
    np.testing.assert_allclose(np.asarray(out), np.asarray(ref), rtol=1e-5, atol=1e-5)

    print("KERNEL_OK")
</pallas_src>

<mosaic_0001>
module attributes {stable_mosaic.version = 11 : i64} {
  func.func @residual_block_kernel(%arg0: i32, %arg1: i32, %arg2: memref<2x12x16xf32, #tpu.memory_space<vmem>>, %arg3: memref<16x12xf32, #tpu.memory_space<vmem>>, %arg4: memref<16x1xf32, #tpu.memory_space<vmem>>, %arg5: memref<2x8x16xf32, #tpu.memory_space<vmem>>) attributes {dimension_semantics = [#tpu.dimension_semantics<parallel>, #tpu.dimension_semantics<parallel>], iteration_bounds = array<i64: 1, 1>, scalar_prefetch = 0 : i64, scratch_operands = 0 : i64, tpu.core_type = #tpu.core_type<tc>, window_params = [{transform_indices = @transform_0, window_bounds = array<i64: 2, 12, 16>}, {pipeline_mode = #tpu.pipeline_mode<synchronous>, transform_indices = @transform_1, window_bounds = array<i64: 16, 12>}, {pipeline_mode = #tpu.pipeline_mode<synchronous>, transform_indices = @transform_2, window_bounds = array<i64: 16, 1>}, {transform_indices = @transform_3, window_bounds = array<i64: 2, 8, 16>}]} {
    %c0 = arith.constant 0 : index
    %c0_0 = arith.constant 0 : index
    %0 = vector.load %arg3[%c0, %c0_0] : memref<16x12xf32, #tpu.memory_space<vmem>>, vector<16x12xf32>
    %c0_1 = arith.constant 0 : index
    %c0_2 = arith.constant 0 : index
    %1 = vector.load %arg4[%c0_1, %c0_2] : memref<16x1xf32, #tpu.memory_space<vmem>>, vector<16x1xf32>
    %c0_3 = arith.constant 0 : index
    %c0_4 = arith.constant 0 : index
    %c0_5 = arith.constant 0 : index
    %2 = vector.load %arg2[%c0_3, %c0_4, %c0_5] : memref<2x12x16xf32, #tpu.memory_space<vmem>>, vector<1x12x16xf32>
    %3 = vector.shape_cast %2 : vector<1x12x16xf32> to vector<12x16xf32>
    %cst = arith.constant dense<0.000000e+00> : vector<16x16xf32>
    %4 = tpu.matmul %0, %3, %cst {dimension_numbers = #tpu.dot_dimension_numbers<[1], [0], [0], [1], [0, 0, 1, 1], [], []>} : vector<16x12xf32>, vector<12x16xf32>, vector<16x16xf32> -> vector<16x16xf32>
    %5 = vector.broadcast %1 : vector<16x1xf32> to vector<16x16xf32>
    %6 = arith.addf %4, %5 : vector<16x16xf32>
    %7 = vector.extract_strided_slice %6 {offsets = [0, 0], sizes = [8, 16], strides = [1, 1]} : vector<16x16xf32> to vector<8x16xf32>
    %cst_6 = arith.constant 0.000000e+00 : f32
    %8 = vector.broadcast %cst_6 : f32 to vector<8x16xf32>
    %9 = arith.maximumf %7, %8 : vector<8x16xf32>
    %10 = vector.extract_strided_slice %6 {offsets = [8, 0], sizes = [8, 16], strides = [1, 1]} : vector<16x16xf32> to vector<8x16xf32>
    %11 = arith.addf %9, %10 : vector<8x16xf32>
    %cst_7 = arith.constant 0.000000e+00 : f32
    %12 = vector.broadcast %cst_7 : f32 to vector<8x16xf32>
    %13 = arith.maximumf %11, %12 : vector<8x16xf32>
    %c0_8 = arith.constant 0 : index
    %c0_9 = arith.constant 0 : index
    %c0_10 = arith.constant 0 : index
    %14 = vector.load %arg5[%c0_8, %c0_9, %c0_10] : memref<2x8x16xf32, #tpu.memory_space<vmem>>, vector<1x8x16xf32>
    %15 = vector.shape_cast %14 : vector<1x8x16xf32> to vector<8x16xf32>
    %16 = vector.shape_cast %13 : vector<8x16xf32> to vector<1x8x16xf32>
    tpu.vector_store %arg5[%c0_8, %c0_9, %c0_10], %16 {strides = array<i32>} : memref<2x8x16xf32, #tpu.memory_space<vmem>>, vector<1x8x16xf32>,
    %c1 = arith.constant 1 : index
    %c0_11 = arith.constant 0 : index
    %c0_12 = arith.constant 0 : index
    %17 = vector.load %arg2[%c1, %c0_11, %c0_12] : memref<2x12x16xf32, #tpu.memory_space<vmem>>, vector<1x12x16xf32>
    %18 = vector.shape_cast %17 : vector<1x12x16xf32> to vector<12x16xf32>
    %cst_13 = arith.constant dense<0.000000e+00> : vector<16x16xf32>
    %19 = tpu.matmul %0, %18, %cst_13 {dimension_numbers = #tpu.dot_dimension_numbers<[1], [0], [0], [1], [0, 0, 1, 1], [], []>} : vector<16x12xf32>, vector<12x16xf32>, vector<16x16xf32> -> vector<16x16xf32>
    %20 = vector.broadcast %1 : vector<16x1xf32> to vector<16x16xf32>
    %21 = arith.addf %19, %20 : vector<16x16xf32>
    %22 = vector.extract_strided_slice %21 {offsets = [0, 0], sizes = [8, 16], strides = [1, 1]} : vector<16x16xf32> to vector<8x16xf32>
    %cst_14 = arith.constant 0.000000e+00 : f32
    %23 = vector.broadcast %cst_14 : f32 to vector<8x16xf32>
    %24 = arith.maximumf %22, %23 : vector<8x16xf32>
    %25 = vector.extract_strided_slice %21 {offsets = [8, 0], sizes = [8, 16], strides = [1, 1]} : vector<16x16xf32> to vector<8x16xf32>
    %26 = arith.addf %24, %25 : vector<8x16xf32>
    %cst_15 = arith.constant 0.000000e+00 : f32
    %27 = vector.broadcast %cst_15 : f32 to vector<8x16xf32>
    %28 = arith.maximumf %26, %27 : vector<8x16xf32>
    %c1_16 = arith.constant 1 : index
    %c0_17 = arith.constant 0 : index
    %c0_18 = arith.constant 0 : index
    %29 = vector.load %arg5[%c1_16, %c0_17, %c0_18] : memref<2x8x16xf32, #tpu.memory_space<vmem>>, vector<1x8x16xf32>
    %30 = vector.shape_cast %29 : vector<1x8x16xf32> to vector<8x16xf32>
    %31 = vector.shape_cast %28 : vector<8x16xf32> to vector<1x8x16xf32>
    tpu.vector_store %arg5[%c1_16, %c0_17, %c0_18], %31 {strides = array<i32>} : memref<2x8x16xf32, #tpu.memory_space<vmem>>, vector<1x8x16xf32>,
    return
  }
  func.func @transform_0(%arg0: i32, %arg1: i32) -> (i32, i32, i32) {
    %c0_i32 = arith.constant 0 : i32
    %c0_i32_0 = arith.constant 0 : i32
    return %arg0, %c0_i32, %arg1 : i32, i32, i32
  }
  func.func @transform_1(%arg0: i32, %arg1: i32) -> (i32, i32) {
    %c0_i32 = arith.constant 0 : i32
    %c0_i32_0 = arith.constant 0 : i32
    %c0_i32_1 = arith.constant 0 : i32
    return %c0_i32, %c0_i32_0 : i32, i32
  }
  func.func @transform_2(%arg0: i32, %arg1: i32) -> (i32, i32) {
    %c0_i32 = arith.constant 0 : i32
    %c0_i32_0 = arith.constant 0 : i32
    %c0_i32_1 = arith.constant 0 : i32
    return %c0_i32, %c0_i32_0 : i32, i32
  }
  func.func @transform_3(%arg0: i32, %arg1: i32) -> (i32, i32, i32) {
    %c0_i32 = arith.constant 0 : i32
    %c0_i32_0 = arith.constant 0 : i32
    return %arg0, %c0_i32, %arg1 : i32, i32, i32
  }
}

</mosaic_0001>

<bundles_post_ra>
// kernel: tpu_custom_call.1
= control target key start
LH: loop header
LB: loop body
LE: loop exit
PB: predicated region body
PF: predicated region fallthrough
CT: control target
= control target key end

     0   :  { %vm38_vm0 = vcmask 1043456   ;;  %vm296_vm1 = vmmov 1   ;;  %vm31_vm3 = vcmask 97280   ;;  %v297_v8 = vmov 0   ;;  %s361_s0 = inlined_call_operand.vmem [shape: f32[2,12,16], index: 0, kind: input, shape index: {}]   ;;  %s362_s1 = inlined_call_operand.vmem [shape: f32[16,12], index: 1, kind: input, shape index: {}]   ;;  %s363_s2 = inlined_call_operand.vmem [shape: f32[16,1], index: 2, kind: input, shape index: {}]   ;;  %s364_s3 = inlined_call_operand.hbm [shape: f32[2,8,16], index: 3, kind: output, shape index: {}]  }
   0x1   :  { %v19_v0 = vld [vmem:[%s361_s0] sm:$0xff]  ;;  %v20_v1 = vld [vmem:[%s361_s0 + $0x8] sm:$0xf]  ;;  %v227_v2 = vld [vmem:[%s361_s0 + $0x10] sm:$0xff]  ;;  %271 = vset.pattern.permute.xlu0 %v297_v8 }
   0x2   :  { %v254_v3 = vpack.c.bf16 %v20_v1, %v19_v0  ;;  %vm255_vm2 = vmpackc.low %vm38_vm0, %vm296_vm1  ;;  %v228_v4 = vld [vmem:[%s361_s0 + $0x18] sm:$0xf]  ;;  %v15_v5 = vld [vmem:[%s362_s1] sm:$0xff] }
   0x3   :  { %v260_v6 = vpack.c.bf16 %v228_v4, %v227_v2  ;;  %244 = vmatprep.mubr.msk.f32.mxu0 %vm31_vm3, %v15_v5  ;;  %251 = vmatprep.mubr.msk.f32.mxu1 %vm31_vm3, %v15_v5  ;;  %v17_v7 = vld [vmem:[%s363_s2] sm:$0xff] }
   0x4   :  { %256 = vmatprep.subr.msk.bf16.mxu0 %vm255_vm2, %v254_v3 }
   0x5   :  { %8 = vsyncpa [#allocation3], 0  ;;  %262 = vmatprep.subr.msk.bf16.mxu1 %vm255_vm2, %v260_v6  ;;  %259 = vmatpush3.bf16.msk.msra.mxu0 %vm255_vm2, %v254_v3  ;;  %v16_v9 = vld [vmem:[%s362_s1 + $0x8] sm:$0xff]  ;;  %s298_s1 = smov [#allocation2]   ;;  %vm120_vm4 = vcmask 130048  }
   0x6   :  { %265 = vmatpush3.bf16.msk.msra.mxu1 %vm255_vm2, %v260_v6  ;;  %23 = vperm.xlu0 %271, %v17_v7   ;;  %v18_v10 = vld [vmem:[%s363_s2 + $0x8] sm:$0xff]  ;;  %s213_s27 = sshll.u32 %s298_s1, 4  ;;  %s214_s27 = int_to_ptr.vmem [resolvable:$true] %s213_s27 }
   0x7   :  { %s272_s2 = scalar_lea.vmem %s214_s27, 256  ;;  %p277_p1 = scmp.lt.s32.totalorder %s214_s27, %s214_s27 }
   0x8   :  { %245 = vmatmul.mubr.msk.f32.vlgmr.msra.gmra.mrb[0].mxu0 %vm31_vm3, %v16_v9  ;;  %p273_p0 = scmp.ne.s32.totalorder %s214_s27, %s272_s2  ;;  %p278_p2 = scmp.lt.s32.totalorder %s272_s2, %s272_s2 }
   0x9   :  { %252 = vmatmul.mubr.msk.f32.vlgmr.msra.gmra.mrb[0].mxu1 %vm31_vm3, %v16_v9 }
   0xa   :  { %28 = vperm.xlu0 %271, %v18_v10   ;;  %p279_p3 = por %p278_p2, %p277_p1 }
   0xc   :  { %p280_p4 = pnand %p279_p3, %p273_p0 }
  0x85   :  { %v24_v11 = vpop.permute.xlu0 %23 }
  0x89   :  { %v29_v12 = vpop.permute.xlu0 %28 }
  0xdb   :  { %v246_v13 = vpop.f32.mrb[0].mxu0 }
  0xdc   :  { %v253_v14 = vpop.f32.mrb[0].mxu1  ;;  %v108_v15 = vpop.f32.mrb[1].mxu0  ;;  %v114_v19 = vadd.f32 %v246_v13, %v29_v12 }
  0xdd   :  { %v109_v16 = vadd.f32 %v108_v15, %v24_v11  ;;  %v194_v17 = vpop.f32.mrb[1].mxu1  ;;  %v200_v21 = vadd.f32 %v253_v14, %v29_v12 }
  0xde   :  { %v195_v18 = vadd.f32 %v194_v17, %v24_v11 }
  0xdf   :  { %v117_v20 = vmax.f32 %v109_v16, 0.0 }
  0xe0   :  { %v203_v22 = vmax.f32 %v195_v18, 0.0 }
  0xe1   :  { %v118_v23 = vadd.f32 %v117_v20, %v114_v19 }
  0xe2   :  { %v204_v24 = vadd.f32 %v203_v22, %v200_v21 }
  0xe3   :  { %v119_v25 = vmax.f32 %v118_v23, 0.0 }
  0xe4   :  { %v205_v26 = vmax.f32 %v204_v24, 0.0 }
  0xe5   :  { %121 = vst.msk [vmem:[#allocation2] sm:$0xff] %vm120_vm4, %v119_v25 }
  0xe6   :  { %207 = vst.msk [vmem:[#allocation2 + $0x8] sm:$0xff] %vm120_vm4, %v205_v26 }
  0xe7   :  { %283 = shalt.err (!%p280_p4)
}
  0xe8   :  { %s284_s30 = scalar_lea.hbm %s364_s3, 256 }
  0xe9   :  { %p285_p5 = scmp.ne.s32.totalorder %s364_s3, %s284_s30  ;;  %p288_p6 = scmp.lt.u32.totalorder %s284_s30, %s364_s3 }
  0xeb   :  { %p290_p7 = pnand %p288_p6, %p285_p5 }
  0xed   :  { %293 = shalt.err (!%p290_p7)
}
  0xee   :  { %s299_s8 = smov 128   ;;  %s300_s9 = smov 8  }
  0xef   :  { %219 = dma.vmem_to_hbm [thread:$0]  %s214_s27, 256, %s364_s3, [#allocation3], %s299_s8, %s299_s8, %s300_s9  }
  0xf0   :  { %294 = dma.done.wait [#allocation3], 256  }
  0xf1   :  { %295 = vsyncadd [#allocation3], 4294967040 }
  0xf2   :  { %223 = vsyncpa [#allocation3], 1 }

</bundles_post_ra>
